<compile_context>
chip_gen: v7x
topology: tpu7x:2x2x1
jax: 0.10.0
libtpu: 0.0.40
codegen_flags: <defaults>
</compile_context>

<pallas_src>
import functools

import jax
import jax.numpy as jnp
from jax.experimental import pallas as pl
from jax.experimental.pallas import tpu as pltpu

IN_F = 128
HID_F = 64
OUT_F = 20


def _round_up(n, m):
    return ((n + m - 1) // m) * m


def mlp_kernel(x_ref, w1_ref, b1_ref, w2_ref, b2_ref, o_ref):
    # x: (bm, 128) f32 -> bf16 operand; weights already bf16 (cast once outside).
    x = x_ref[...].astype(jnp.bfloat16)

    # Linear 1 (bf16 MXU matmul, f32 accumulation) + bias + ReLU
    h = jnp.dot(x, w1_ref[...], preferred_element_type=jnp.float32)
    h = jnp.maximum(h + b1_ref[...], 0.0)                       # (bm, 64) f32

    # Linear 2 (bf16 MXU matmul, f32 accumulation) + bias
    y = jnp.dot(h.astype(jnp.bfloat16), w2_ref[...],
                preferred_element_type=jnp.float32)
    o_ref[...] = (y + b2_ref[...]).astype(o_ref.dtype)          # (bm, 20) f32


def prepare_params(w1, b1, w2, b2):
    """One-time parameter prep (hoisted out of the per-forward path)."""
    w1_bf = jnp.asarray(w1, jnp.float32).astype(jnp.bfloat16)        # (128, 64)
    w2_bf = jnp.asarray(w2, jnp.float32).astype(jnp.bfloat16)        # (64, 20)
    b1_2d = jnp.asarray(b1, jnp.float32).reshape(1, HID_F)           # (1, 64)
    b2_2d = jnp.asarray(b2, jnp.float32).reshape(1, OUT_F)           # (1, 20)
    return w1_bf, b1_2d, w2_bf, b2_2d


def _choose_row_tile(B, bm):
    """Pick the per-step row tile (B, bm are Python ints at trace time)."""
    if B <= bm:
        # Single full-extent block is always layout-legal. For batches big
        # enough to matter, split into 2 steps so v7x's two TensorCores both
        # get work (dimension_semantics=("parallel",)).
        if B >= 512 and B % 16 == 0:
            return B // 2
        return B
    # Multi-step grid: tiles are multiples of 8; cap so there are >= 2 steps.
    bm_eff = min(bm, _round_up((B + 1) // 2, 8))
    return max(8, (bm_eff // 8) * 8)


@functools.partial(jax.jit, static_argnames=("bm",))
def mlp_forward(x, params, *, bm=1024):
    """x: (B, 128) f32; params: output of prepare_params()."""
    w1_bf, b1_2d, w2_bf, b2_2d = params
    B = x.shape[0]
    bm_eff = _choose_row_tile(B, bm)
    grid = (pl.cdiv(B, bm_eff),)   # partial last block handled by Pallas

    return pl.pallas_call(
        mlp_kernel,
        out_shape=jax.ShapeDtypeStruct((B, OUT_F), jnp.float32),
        grid_spec=pltpu.PrefetchScalarGridSpec(
            num_scalar_prefetch=0,
            grid=grid,
            in_specs=[
                pl.BlockSpec((bm_eff, IN_F), lambda i: (i, 0)),    # x row tile
                pl.BlockSpec((IN_F, HID_F), lambda i: (0, 0)),     # W1 (resident)
                pl.BlockSpec((1, HID_F), lambda i: (0, 0)),        # b1
                pl.BlockSpec((HID_F, OUT_F), lambda i: (0, 0)),    # W2 (resident)
                pl.BlockSpec((1, OUT_F), lambda i: (0, 0)),        # b2
            ],
            out_specs=pl.BlockSpec((bm_eff, OUT_F), lambda i: (i, 0)),
        ),
        compiler_params=pltpu.CompilerParams(
            dimension_semantics=("parallel",)),
    )(x, w1_bf, b1_2d, w2_bf, b2_2d)


def reference_forward(x, w1, b1, w2, b2):
    # Same mixed-precision recipe in plain JAX for validation.
    h = jnp.dot(x.astype(jnp.bfloat16), w1.astype(jnp.bfloat16),
                preferred_element_type=jnp.float32) + b1.reshape(1, HID_F)
    h = jnp.maximum(h, 0.0)
    y = jnp.dot(h.astype(jnp.bfloat16), w2.astype(jnp.bfloat16),
                preferred_element_type=jnp.float32) + b2.reshape(1, OUT_F)
    return y


if __name__ == "__main__":
    key = jax.random.PRNGKey(0)
    kx, k1, k2, k3, k4 = jax.random.split(key, 5)

    # Small batch; also exercised below with a small tile -> multi-step grid
    # with a partial last block (200 = 3*64 + 8).
    B = 200
    x = jax.random.normal(kx, (B, IN_F), dtype=jnp.float32)

    # Deterministic parameter init (uniform, PyTorch-like fan-in scaling).
    bound1 = 1.0 / (IN_F ** 0.5)
    w1 = jax.random.uniform(k1, (IN_F, HID_F), jnp.float32, -bound1, bound1)
    b1 = jax.random.uniform(k2, (HID_F,), jnp.float32, -bound1, bound1)
    bound2 = 1.0 / (HID_F ** 0.5)
    w2 = jax.random.uniform(k3, (HID_F, OUT_F), jnp.float32, -bound2, bound2)
    b2 = jax.random.uniform(k4, (OUT_F,), jnp.float32, -bound2, bound2)

    params = prepare_params(w1, b1, w2, b2)
    ref = reference_forward(x, w1, b1, w2, b2)

    # 1) Default tile: whole batch in one grid step.
    out1 = jax.block_until_ready(mlp_forward(x, params))
    assert out1.shape == (B, OUT_F)
    assert jnp.allclose(out1, ref, atol=1e-2, rtol=1e-2), "mismatch (single block)"

    # 2) Small tile: 4 grid steps incl. a partial last block (boundary masking).
    out2 = jax.block_until_ready(mlp_forward(x, params, bm=64))
    assert out2.shape == (B, OUT_F)
    assert jnp.allclose(out2, ref, atol=1e-2, rtol=1e-2), "mismatch (multi-step grid)"

    print("KERNEL_OK")
</pallas_src>

<mosaic_0001>
module attributes {stable_mosaic.version = 11 : i64} {
  func.func @mlp_kernel(%arg0: i32, %arg1: memref<200x128xf32, #tpu.memory_space<vmem>>, %arg2: memref<128x64xbf16, #tpu.memory_space<vmem>>, %arg3: memref<1x64xf32, #tpu.memory_space<vmem>>, %arg4: memref<64x20xbf16, #tpu.memory_space<vmem>>, %arg5: memref<1x20xf32, #tpu.memory_space<vmem>>, %arg6: memref<200x20xf32, #tpu.memory_space<vmem>>) attributes {dimension_semantics = [#tpu.dimension_semantics<parallel>], iteration_bounds = array<i64: 1>, scalar_prefetch = 0 : i64, scratch_operands = 0 : i64, tpu.core_type = #tpu.core_type<tc>, window_params = [{transform_indices = @transform_0, window_bounds = array<i64: 200, 128>}, {pipeline_mode = #tpu.pipeline_mode<synchronous>, transform_indices = @transform_1, window_bounds = array<i64: 128, 64>}, {pipeline_mode = #tpu.pipeline_mode<synchronous>, transform_indices = @transform_2, window_bounds = array<i64: 1, 64>}, {pipeline_mode = #tpu.pipeline_mode<synchronous>, transform_indices = @transform_3, window_bounds = array<i64: 64, 20>}, {pipeline_mode = #tpu.pipeline_mode<synchronous>, transform_indices = @transform_4, window_bounds = array<i64: 1, 20>}, {transform_indices = @transform_5, window_bounds = array<i64: 200, 20>}]} {
    %c0 = arith.constant 0 : index
    %c0_0 = arith.constant 0 : index
    %0 = vector.load %arg1[%c0, %c0_0] : memref<200x128xf32, #tpu.memory_space<vmem>>, vector<200x128xf32>
    %1 = arith.truncf %0 : vector<200x128xf32> to vector<200x128xbf16>
    %c0_1 = arith.constant 0 : index
    %c0_2 = arith.constant 0 : index
    %2 = vector.load %arg2[%c0_1, %c0_2] : memref<128x64xbf16, #tpu.memory_space<vmem>>, vector<128x64xbf16>
    %cst = arith.constant dense<0.000000e+00> : vector<200x64xf32>
    %3 = tpu.matmul %1, %2, %cst {dimension_numbers = #tpu.dot_dimension_numbers<[1], [0], [0], [1], [0, 0, 1, 1], [], []>} : vector<200x128xbf16>, vector<128x64xbf16>, vector<200x64xf32> -> vector<200x64xf32>
    %c0_3 = arith.constant 0 : index
    %c0_4 = arith.constant 0 : index
    %4 = vector.load %arg3[%c0_3, %c0_4] : memref<1x64xf32, #tpu.memory_space<vmem>>, vector<1x64xf32>
    %5 = vector.broadcast %4 : vector<1x64xf32> to vector<200x64xf32>
    %6 = arith.addf %3, %5 : vector<200x64xf32>
    %cst_5 = arith.constant 0.000000e+00 : f32
    %7 = vector.broadcast %cst_5 : f32 to vector<200x64xf32>
    %8 = arith.maximumf %6, %7 : vector<200x64xf32>
    %9 = arith.truncf %8 : vector<200x64xf32> to vector<200x64xbf16>
    %c0_6 = arith.constant 0 : index
    %c0_7 = arith.constant 0 : index
    %10 = vector.load %arg4[%c0_6, %c0_7] : memref<64x20xbf16, #tpu.memory_space<vmem>>, vector<64x20xbf16>
    %cst_8 = arith.constant dense<0.000000e+00> : vector<200x20xf32>
    %11 = tpu.matmul %9, %10, %cst_8 {dimension_numbers = #tpu.dot_dimension_numbers<[1], [0], [0], [1], [0, 0, 1, 1], [], []>} : vector<200x64xbf16>, vector<64x20xbf16>, vector<200x20xf32> -> vector<200x20xf32>
    %c0_9 = arith.constant 0 : index
    %c0_10 = arith.constant 0 : index
    %12 = vector.load %arg5[%c0_9, %c0_10] : memref<1x20xf32, #tpu.memory_space<vmem>>, vector<1x20xf32>
    %13 = vector.broadcast %12 : vector<1x20xf32> to vector<200x20xf32>
    %14 = arith.addf %11, %13 : vector<200x20xf32>
    %c0_11 = arith.constant 0 : index
    %c0_12 = arith.constant 0 : index
    %15 = vector.load %arg6[%c0_11, %c0_12] : memref<200x20xf32, #tpu.memory_space<vmem>>, vector<200x20xf32>
    tpu.vector_store %arg6[%c0_11, %c0_12], %14 {strides = array<i32>} : memref<200x20xf32, #tpu.memory_space<vmem>>, vector<200x20xf32>,
    return
  }
  func.func @transform_0(%arg0: i32) -> (i32, i32) {
    %c0_i32 = arith.constant 0 : i32
    %c0_i32_0 = arith.constant 0 : i32
    return %arg0, %c0_i32 : i32, i32
  }
  func.func @transform_1(%arg0: i32) -> (i32, i32) {
    %c0_i32 = arith.constant 0 : i32
    %c0_i32_0 = arith.constant 0 : i32
    %c0_i32_1 = arith.constant 0 : i32
    return %c0_i32, %c0_i32_0 : i32, i32
  }
  func.func @transform_2(%arg0: i32) -> (i32, i32) {
    %c0_i32 = arith.constant 0 : i32
    %c0_i32_0 = arith.constant 0 : i32
    %c0_i32_1 = arith.constant 0 : i32
    return %c0_i32, %c0_i32_0 : i32, i32
  }
  func.func @transform_3(%arg0: i32) -> (i32, i32) {
    %c0_i32 = arith.constant 0 : i32
    %c0_i32_0 = arith.constant 0 : i32
    %c0_i32_1 = arith.constant 0 : i32
    return %c0_i32, %c0_i32_0 : i32, i32
  }
  func.func @transform_4(%arg0: i32) -> (i32, i32) {
    %c0_i32 = arith.constant 0 : i32
    %c0_i32_0 = arith.constant 0 : i32
    %c0_i32_1 = arith.constant 0 : i32
    return %c0_i32, %c0_i32_0 : i32, i32
  }
  func.func @transform_5(%arg0: i32) -> (i32, i32) {
    %c0_i32 = arith.constant 0 : i32
    %c0_i32_0 = arith.constant 0 : i32
    return %arg0, %c0_i32 : i32, i32
  }
}

</mosaic_0001>

<bundles_post_ra>
// kernel: mlp_forward.1
= control target key start
LH: loop header
LB: loop body
LE: loop exit
PB: predicated region body
PF: predicated region fallthrough
CT: control target
= control target key end

     0   :  { %10 = vsyncpa [#allocation3], 0  ;;  %s798_s18 = smov [#allocation2]   ;;  %s1118_s0 = inlined_call_operand.hbm [shape: f32[200,128], index: 0, kind: input, shape index: {}]   ;;  %s1119_s1 = inlined_call_operand.vmem [shape: bf16[128,64], index: 1, kind: input, shape index: {}]   ;;  %s1120_s2 = inlined_call_operand.vmem [shape: f32[1,64], index: 2, kind: input, shape index: {}]   ;;  %s1121_s3 = inlined_call_operand.vmem [shape: bf16[64,20], index: 3, kind: input, shape index: {}]   ;;  %s1122_s4 = inlined_call_operand.vmem [shape: f32[1,20], index: 4, kind: input, shape index: {}]   ;;  %s1123_s5 = inlined_call_operand.vmem [shape: f32[200,20], index: 5, kind: output, shape index: {}]  }
   0x1   :  { %s16_s19 = sshll.u32 %s798_s18, 4  ;;  %s774_s22 = scalar_lea.hbm %s1118_s0, 3200  ;;  %s17_s19 = int_to_ptr.vmem [resolvable:$true] %s16_s19 }
   0x2   :  { %p775_p0 = scmp.ne.s32.totalorder %s1118_s0, %s774_s22  ;;  %p778_p1 = scmp.lt.u32.totalorder %s774_s22, %s1118_s0 }
   0x4   :  { %p780_p2 = pnand %p778_p1, %p775_p0 }
   0x6   :  { %783 = shalt.err (!%p780_p2)
}
   0x7   :  { %s784_s27 = scalar_lea.vmem %s17_s19, 3200  ;;  %p789_p4 = scmp.lt.s32.totalorder %s17_s19, %s17_s19 }
   0x8   :  { %p785_p3 = scmp.ne.s32.totalorder %s17_s19, %s784_s27  ;;  %p790_p5 = scmp.lt.s32.totalorder %s784_s27, %s784_s27 }
   0xa   :  { %p791_p6 = por %p790_p5, %p789_p4 }
   0xc   :  { %p792_p7 = pnand %p791_p6, %p785_p3 }
   0xe   :  { %795 = shalt.err (!%p792_p7)
}
   0xf   :  { %s799_s28 = smov 128   ;;  %s800_s29 = smov 8  }
  0x10   :  { %22 = dma.hbm_to_vmem [thread:$0]  %s1118_s0, 3200, %s17_s19, [#allocation3], %s799_s28, %s799_s28, %s800_s29  }
  0x11   :  { %796 = dma.done.wait [#allocation3], 3200  }
  0x12   :  { %797 = vsyncadd [#allocation3], 4294964096  ;;  %v801_v0 = vmov 0.0   ;;  %vm802_vm0 = vmmov 0   ;;  %v762_v1 = vld [vmem:[%s1119_s1] sm:$0xff]   ;;  %v763_v2 = vld [vmem:[%s1119_s1 + $0x8] sm:$0xff]  }
  0x13   :  { %629 = vmatprep.subr.bf16.mxu0 %v801_v0  ;;  %645 = vmatprep.mubr.msk.bf16.mxu0 %vm802_vm0, %v801_v0  ;;  %v764_v3 = vld [vmem:[%s1119_s1 + $0x10] sm:$0xff]   ;;  %v765_v4 = vld [vmem:[%s1119_s1 + $0x18] sm:$0xff]   ;;  %v766_v5 = vld [vmem:[%s1119_s1 + $0x20] sm:$0xff]   ;;  %vm357_vm1 = vcmask 523264   ;;  %vm533_vm2 = vcmask 162816  }
  0x14   :  { %697 = vmatprep.subr.bf16.mxu1 %v801_v0  ;;  %705 = vmatprep.mubr.msk.bf16.mxu1 %vm802_vm0, %v801_v0  ;;  %v770_v6 = vld [vmem:[%s1121_s3] sm:$0xff]   ;;  %v767_v7 = vld [vmem:[%s1119_s1 + $0x28] sm:$0xff]   ;;  %v768_v9 = vld [vmem:[%s1119_s1 + $0x30] sm:$0xff]  }
  0x15   :  { %630 = vmatpush3.bf16.msra.mxu0 %v762_v1  ;;  %v771_v8 = vld [vmem:[%s1121_s3 + $0x8] sm:$0xff]   ;;  %698 = vmatpush3.bf16.msra.mxu1 %v770_v6  ;;  %v769_v10 = vld [vmem:[%s1119_s1 + $0x38] sm:$0xff]   ;;  %v35_v11 = vld [vmem:[#allocation2] sm:$0xff] }
  0x16   :  { %631 = vmatprep.subr.bf16.mxu0 %v801_v0  ;;  %699 = vmatprep.subr.bf16.mxu1 %v801_v0  ;;  %v36_v12 = vld [vmem:[#allocation2 + $0x8] sm:$0xff]  ;;  %v37_v14 = vld [vmem:[#allocation2 + $0x10] sm:$0xff]  ;;  %v38_v15 = vld [vmem:[#allocation2 + $0x18] sm:$0xff] }
  0x17   :  { %v60_v13 = vpack.c.bf16 %v36_v12, %v35_v11  ;;  %v61_v16 = vpack.c.bf16 %v38_v15, %v37_v14  ;;  %v39_v17 = vld [vmem:[#allocation2 + $0x20] sm:$0xff]  ;;  %v40_v18 = vld [vmem:[#allocation2 + $0x28] sm:$0xff]  ;;  %v41_v20 = vld [vmem:[#allocation2 + $0x30] sm:$0xff] }
  0x18   :  { %v62_v19 = vpack.c.bf16 %v40_v18, %v39_v17  ;;  %v42_v21 = vld [vmem:[#allocation2 + $0x38] sm:$0xff]  ;;  %v43_v23 = vld [vmem:[#allocation2 + $0x40] sm:$0xff]  ;;  %v44_v24 = vld [vmem:[#allocation2 + $0x48] sm:$0xff] }
  0x19   :  { %632 = vmatpush3.bf16.msra.mxu0 %v763_v2  ;;  %700 = vmatpush3.bf16.msra.mxu1 %v771_v8  ;;  %v63_v22 = vpack.c.bf16 %v42_v21, %v41_v20  ;;  %v64_v25 = vpack.c.bf16 %v44_v24, %v43_v23  ;;  %v45_v26 = vld [vmem:[#allocation2 + $0x50] sm:$0xff]  ;;  %v46_v27 = vld [vmem:[#allocation2 + $0x58] sm:$0xff]  ;;  %v47_v29 = vld [vmem:[#allocation2 + $0x60] sm:$0xff] }
  0x1a   :  { %633 = vmatprep.subr.bf16.mxu0 %v801_v0  ;;  %701 = vmatprep.subr.bf16.mxu1 %v801_v0  ;;  %v65_v28 = vpack.c.bf16 %v46_v27, %v45_v26  ;;  %v48_v30 = vld [vmem:[#allocation2 + $0x68] sm:$0xff]  ;;  %v49_v32 = vld [vmem:[#allocation2 + $0x70] sm:$0xff]  ;;  %v50_v33 = vld [vmem:[#allocation2 + $0x78] sm:$0xff] }
  0x1b   :  { %v66_v31 = vpack.c.bf16 %v48_v30, %v47_v29  ;;  %v67_v34 = vpack.c.bf16 %v50_v33, %v49_v32  ;;  %v51_v35 = vld [vmem:[#allocation2 + $0x80] sm:$0xff]  ;;  %v52_v36 = vld [vmem:[#allocation2 + $0x88] sm:$0xff]  ;;  %v53_v38 = vld [vmem:[#allocation2 + $0x90] sm:$0xff] }
  0x1c   :  { %v68_v37 = vpack.c.bf16 %v52_v36, %v51_v35  ;;  %v54_v39 = vld [vmem:[#allocation2 + $0x98] sm:$0xff]  ;;  %v55_v41 = vld [vmem:[#allocation2 + $0xa0] sm:$0xff]  ;;  %v56_v42 = vld [vmem:[#allocation2 + $0xa8] sm:$0xff] }
  0x1d   :  { %634 = vmatpush3.bf16.msra.mxu0 %v764_v3  ;;  %v69_v40 = vpack.c.bf16 %v54_v39, %v53_v38  ;;  %v70_v43 = vpack.c.bf16 %v56_v42, %v55_v41  ;;  %v57_v44 = vld [vmem:[#allocation2 + $0xb0] sm:$0xff]  ;;  %v58_v45 = vld [vmem:[#allocation2 + $0xb8] sm:$0xff]  ;;  %v59_v49 = vld [vmem:[#allocation2 + $0xc0] sm:$0xff] }
  0x1e   :  { %635 = vmatprep.subr.bf16.mxu0 %v801_v0  ;;  %v772_v46 = vld [vmem:[%s1121_s3 + $0x10] sm:$0xff]   ;;  %v71_v47 = vpack.c.bf16 %v58_v45, %v57_v44  ;;  %v773_v48 = vld [vmem:[%s1121_s3 + $0x18] sm:$0xff]   ;;  %v72_v50 = vpack.c.bf16 %v59_v49, %v59_v49  ;;  %v924_v51 = vld [vmem:[%s1120_s2] ss:$0 sm:$0xff] }
  0x1f   :  { %702 = vmatpush3.bf16.msra.mxu1 %v772_v46 }
  0x20   :  { %703 = vmatprep.subr.bf16.mxu1 %v801_v0 }
  0x21   :  { %636 = vmatpush3.bf16.msra.mxu0 %v765_v4 }
  0x22   :  { %637 = vmatprep.subr.bf16.mxu0 %v801_v0 }
  0x23   :  { %704 = vmatpush3.bf16.msra.mxu1 %v773_v48 }
  0x25   :  { %638 = vmatpush3.bf16.msra.mxu0 %v766_v5 }
  0x26   :  { %639 = vmatprep.subr.bf16.mxu0 %v801_v0 }
  0x29   :  { %640 = vmatpush3.bf16.msra.mxu0 %v767_v7 }
  0x2a   :  { %641 = vmatprep.subr.bf16.mxu0 %v801_v0 }
  0x2d   :  { %642 = vmatpush3.bf16.msra.mxu0 %v768_v9 }
  0x2e   :  { %643 = vmatprep.subr.bf16.mxu0 %v801_v0 }
  0x31   :  { %644 = vmatpush3.bf16.msra.mxu0 %v769_v10 }
  0x34   :  { %646 = vmatmul.mubr.bf16.vlgmr.msra.gmra.mrb[0].mxu0 %v60_v13 }
  0x35   :  { %649 = vmatprep.mubr.msk.bf16.mxu0 %vm802_vm0, %v801_v0 }
  0x3c   :  { %650 = vmatmul.mubr.bf16.gmra.mrb[4].mxu0 %v61_v16 }
  0x3d   :  { %653 = vmatprep.mubr.msk.bf16.mxu0 %vm802_vm0, %v801_v0 }
  0x44   :  { %654 = vmatmul.mubr.bf16.gmra.mrb[8].mxu0 %v62_v19 }
  0x45   :  { %657 = vmatprep.mubr.msk.bf16.mxu0 %vm802_vm0, %v801_v0 }
  0x4c   :  { %658 = vmatmul.mubr.bf16.gmra.mrb[12].mxu0 %v63_v22 }
  0x4d   :  { %661 = vmatprep.mubr.msk.bf16.mxu0 %vm802_vm0, %v801_v0 }
  0x54   :  { %662 = vmatmul.mubr.bf16.gmra.mrb[16].mxu0 %v64_v25 }
  0x55   :  { %665 = vmatprep.mubr.msk.bf16.mxu0 %vm802_vm0, %v801_v0 }
  0x5c   :  { %666 = vmatmul.mubr.bf16.gmra.mrb[20].mxu0 %v65_v28 }
  0x5d   :  { %669 = vmatprep.mubr.msk.bf16.mxu0 %vm802_vm0, %v801_v0 }
  0x64   :  { %670 = vmatmul.mubr.bf16.gmra.mrb[24].mxu0 %v66_v31 }
  0x65   :  { %673 = vmatprep.mubr.msk.bf16.mxu0 %vm802_vm0, %v801_v0 }
  0x6c   :  { %674 = vmatmul.mubr.bf16.gmra.mrb[28].mxu0 %v67_v34 }
  0x6d   :  { %677 = vmatprep.mubr.msk.bf16.mxu0 %vm802_vm0, %v801_v0 }
  0x74   :  { %678 = vmatmul.mubr.bf16.gmra.mrb[32].mxu0 %v68_v37 }
  0x75   :  { %681 = vmatprep.mubr.msk.bf16.mxu0 %vm802_vm0, %v801_v0 }
  0x7c   :  { %682 = vmatmul.mubr.bf16.gmra.mrb[36].mxu0 %v69_v40 }
  0x7d   :  { %685 = vmatprep.mubr.msk.bf16.mxu0 %vm802_vm0, %v801_v0 }
  0x84   :  { %686 = vmatmul.mubr.bf16.gmra.mrb[40].mxu0 %v70_v43 }
  0x85   :  { %689 = vmatprep.mubr.msk.bf16.mxu0 %vm802_vm0, %v801_v0 }
  0x8c   :  { %690 = vmatmul.mubr.bf16.gmra.mrb[44].mxu0 %v71_v47 }
  0x8d   :  { %693 = vmatprep.mubr.msk.bf16.mxu0 %vm802_vm0, %v801_v0 }
  0x94   :  { %694 = vmatmul.mubr.bf16.gmra.mrb[48].mxu0 %v72_v50 }
 0x107   :  { %v178_v52 = vpop.f32.mrb[0].mxu0 }
 0x108   :  { %v179_v53 = vadd.f32 %v924_v51, %v178_v52  ;;  %v647_v54 = vpop.f32.mrb[1].mxu0 }
 0x109   :  { %v181_v55 = vpop.f32.mrb[2].mxu0 }
 0x10a   :  { %v182_v56 = vadd.f32 %v924_v51, %v181_v55  ;;  %v648_v57 = vpop.f32.mrb[3].mxu0  ;;  %v280_v58 = vmax.f32 %v179_v53, 0.0 }
 0x10c   :  { %v281_v59 = vmax.f32 %v182_v56, 0.0 }
 0x10e   :  { %v305_v60 = vpack.c.bf16 %v281_v59, %v280_v58 }
 0x10f   :  { %v186_v61 = vpop.f32.mrb[4].mxu0 }
 0x110   :  { %v187_v62 = vadd.f32 %v924_v51, %v186_v61  ;;  %v651_v63 = vpop.f32.mrb[5].mxu0  ;;  %706 = vmatmul.mubr.msk.bf16.vlgmr.msra.gmra.mrb[0].mxu1 %vm357_vm1, %v305_v60 }
 0x111   :  { %v189_v1 = vpop.f32.mrb[6].mxu0  ;;  %709 = vmatprep.mubr.msk.bf16.mxu1 %vm802_vm0, %v801_v0 }
 0x112   :  { %v190_v2 = vadd.f32 %v924_v51, %v189_v1  ;;  %v652_v3 = vpop.f32.mrb[7].mxu0  ;;  %v282_v4 = vmax.f32 %v187_v62, 0.0 }
 0x114   :  { %v283_v5 = vmax.f32 %v190_v2, 0.0 }
 0x116   :  { %v306_v6 = vpack.c.bf16 %v283_v5, %v282_v4 }
 0x117   :  { %v194_v7 = vpop.f32.mrb[8].mxu0 }
 0x118   :  { %v195_v8 = vadd.f32 %v924_v51, %v194_v7  ;;  %v655_v9 = vpop.f32.mrb[9].mxu0  ;;  %710 = vmatmul.mubr.msk.bf16.gmra.mrb[4].mxu1 %vm357_vm1, %v306_v6 }
 0x119   :  { %v197_v10 = vpop.f32.mrb[10].mxu0  ;;  %713 = vmatprep.mubr.msk.bf16.mxu1 %vm802_vm0, %v801_v0 }
 0x11a   :  { %v198_v11 = vadd.f32 %v924_v51, %v197_v10  ;;  %v656_v12 = vpop.f32.mrb[11].mxu0  ;;  %v284_v13 = vmax.f32 %v195_v8, 0.0 }
 0x11c   :  { %v285_v14 = vmax.f32 %v198_v11, 0.0 }
 0x11e   :  { %v307_v15 = vpack.c.bf16 %v285_v14, %v284_v13 }
 0x11f   :  { %v202_v16 = vpop.f32.mrb[12].mxu0 }
 0x120   :  { %v203_v17 = vadd.f32 %v924_v51, %v202_v16  ;;  %v659_v18 = vpop.f32.mrb[13].mxu0  ;;  %714 = vmatmul.mubr.msk.bf16.gmra.mrb[8].mxu1 %vm357_vm1, %v307_v15 }
 0x121   :  { %v205_v19 = vpop.f32.mrb[14].mxu0  ;;  %717 = vmatprep.mubr.msk.bf16.mxu1 %vm802_vm0, %v801_v0 }
 0x122   :  { %v206_v20 = vadd.f32 %v924_v51, %v205_v19  ;;  %v660_v21 = vpop.f32.mrb[15].mxu0  ;;  %v286_v22 = vmax.f32 %v203_v17, 0.0 }
 0x124   :  { %v287_v23 = vmax.f32 %v206_v20, 0.0 }
 0x126   :  { %v308_v24 = vpack.c.bf16 %v287_v23, %v286_v22 }
 0x127   :  { %v210_v25 = vpop.f32.mrb[16].mxu0 }
 0x128   :  { %v211_v26 = vadd.f32 %v924_v51, %v210_v25  ;;  %v663_v27 = vpop.f32.mrb[17].mxu0  ;;  %718 = vmatmul.mubr.msk.bf16.gmra.mrb[12].mxu1 %vm357_vm1, %v308_v24 }
 0x129   :  { %v213_v28 = vpop.f32.mrb[18].mxu0  ;;  %721 = vmatprep.mubr.msk.bf16.mxu1 %vm802_vm0, %v801_v0 }
 0x12a   :  { %v214_v29 = vadd.f32 %v924_v51, %v213_v28  ;;  %v664_v30 = vpop.f32.mrb[19].mxu0  ;;  %v288_v31 = vmax.f32 %v211_v26, 0.0 }
 0x12c   :  { %v289_v32 = vmax.f32 %v214_v29, 0.0 }
 0x12e   :  { %v309_v33 = vpack.c.bf16 %v289_v32, %v288_v31 }
 0x12f   :  { %v218_v34 = vpop.f32.mrb[20].mxu0 }
 0x130   :  { %v219_v35 = vadd.f32 %v924_v51, %v218_v34  ;;  %v667_v36 = vpop.f32.mrb[21].mxu0  ;;  %722 = vmatmul.mubr.msk.bf16.gmra.mrb[16].mxu1 %vm357_vm1, %v309_v33 }
 0x131   :  { %v221_v37 = vpop.f32.mrb[22].mxu0  ;;  %725 = vmatprep.mubr.msk.bf16.mxu1 %vm802_vm0, %v801_v0 }
 0x132   :  { %v222_v38 = vadd.f32 %v924_v51, %v221_v37  ;;  %v668_v39 = vpop.f32.mrb[23].mxu0  ;;  %v290_v40 = vmax.f32 %v219_v35, 0.0 }
 0x134   :  { %v291_v41 = vmax.f32 %v222_v38, 0.0 }
 0x136   :  { %v310_v42 = vpack.c.bf16 %v291_v41, %v290_v40 }
 0x137   :  { %v226_v43 = vpop.f32.mrb[24].mxu0 }
 0x138   :  { %v227_v44 = vadd.f32 %v924_v51, %v226_v43  ;;  %v671_v45 = vpop.f32.mrb[25].mxu0  ;;  %726 = vmatmul.mubr.msk.bf16.gmra.mrb[20].mxu1 %vm357_vm1, %v310_v42  ;;  %v991_v42 = vld [vmem:[%s1122_s4] ss:$0 sm:$0xff] }
 0x139   :  { %v229_v46 = vpop.f32.mrb[26].mxu0  ;;  %729 = vmatprep.mubr.msk.bf16.mxu1 %vm802_vm0, %v801_v0 }
 0x13a   :  { %v230_v47 = vadd.f32 %v924_v51, %v229_v46  ;;  %v672_v48 = vpop.f32.mrb[27].mxu0  ;;  %v292_v49 = vmax.f32 %v227_v44, 0.0 }
 0x13c   :  { %v293_v50 = vmax.f32 %v230_v47, 0.0 }
 0x13e   :  { %v311_v52 = vpack.c.bf16 %v293_v50, %v292_v49 }
 0x13f   :  { %v234_v53 = vpop.f32.mrb[28].mxu0 }
 0x140   :  { %v235_v54 = vadd.f32 %v924_v51, %v234_v53  ;;  %v675_v55 = vpop.f32.mrb[29].mxu0  ;;  %730 = vmatmul.mubr.msk.bf16.gmra.mrb[24].mxu1 %vm357_vm1, %v311_v52 }
 0x141   :  { %v237_v56 = vpop.f32.mrb[30].mxu0  ;;  %733 = vmatprep.mubr.msk.bf16.mxu1 %vm802_vm0, %v801_v0 }
 0x142   :  { %v238_v57 = vadd.f32 %v924_v51, %v237_v56  ;;  %v676_v58 = vpop.f32.mrb[31].mxu0  ;;  %v294_v59 = vmax.f32 %v235_v54, 0.0 }
 0x144   :  { %v295_v60 = vmax.f32 %v238_v57, 0.0 }
 0x146   :  { %v312_v61 = vpack.c.bf16 %v295_v60, %v294_v59 }
 0x147   :  { %v242_v62 = vpop.f32.mrb[32].mxu0 }
 0x148   :  { %v243_v63 = vadd.f32 %v924_v51, %v242_v62  ;;  %v679_v1 = vpop.f32.mrb[33].mxu0  ;;  %734 = vmatmul.mubr.msk.bf16.gmra.mrb[28].mxu1 %vm357_vm1, %v312_v61 }
 0x149   :  { %v245_v2 = vpop.f32.mrb[34].mxu0  ;;  %737 = vmatprep.mubr.msk.bf16.mxu1 %vm802_vm0, %v801_v0 }
 0x14a   :  { %v246_v3 = vadd.f32 %v924_v51, %v245_v2  ;;  %v680_v4 = vpop.f32.mrb[35].mxu0  ;;  %v296_v5 = vmax.f32 %v243_v63, 0.0 }
 0x14c   :  { %v297_v6 = vmax.f32 %v246_v3, 0.0 }
 0x14e   :  { %v313_v7 = vpack.c.bf16 %v297_v6, %v296_v5 }
 0x14f   :  { %v250_v8 = vpop.f32.mrb[36].mxu0 }
 0x150   :  { %v251_v9 = vadd.f32 %v924_v51, %v250_v8  ;;  %v683_v10 = vpop.f32.mrb[37].mxu0  ;;  %738 = vmatmul.mubr.msk.bf16.gmra.mrb[32].mxu1 %vm357_vm1, %v313_v7 }
 0x151   :  { %v253_v11 = vpop.f32.mrb[38].mxu0  ;;  %741 = vmatprep.mubr.msk.bf16.mxu1 %vm802_vm0, %v801_v0 }
 0x152   :  { %v254_v12 = vadd.f32 %v924_v51, %v253_v11  ;;  %v684_v13 = vpop.f32.mrb[39].mxu0  ;;  %v298_v14 = vmax.f32 %v251_v9, 0.0 }
 0x154   :  { %v299_v15 = vmax.f32 %v254_v12, 0.0 }
 0x156   :  { %v314_v16 = vpack.c.bf16 %v299_v15, %v298_v14 }
 0x157   :  { %v258_v17 = vpop.f32.mrb[40].mxu0 }
 0x158   :  { %v259_v18 = vadd.f32 %v924_v51, %v258_v17  ;;  %v687_v19 = vpop.f32.mrb[41].mxu0  ;;  %742 = vmatmul.mubr.msk.bf16.gmra.mrb[36].mxu1 %vm357_vm1, %v314_v16 }
 0x159   :  { %v261_v20 = vpop.f32.mrb[42].mxu0  ;;  %745 = vmatprep.mubr.msk.bf16.mxu1 %vm802_vm0, %v801_v0 }
 0x15a   :  { %v262_v21 = vadd.f32 %v924_v51, %v261_v20  ;;  %v688_v22 = vpop.f32.mrb[43].mxu0  ;;  %v300_v23 = vmax.f32 %v259_v18, 0.0 }
 0x15c   :  { %v301_v24 = vmax.f32 %v262_v21, 0.0 }
 0x15e   :  { %v315_v25 = vpack.c.bf16 %v301_v24, %v300_v23 }
 0x15f   :  { %v266_v26 = vpop.f32.mrb[44].mxu0 }
 0x160   :  { %v267_v27 = vadd.f32 %v924_v51, %v266_v26  ;;  %v691_v28 = vpop.f32.mrb[45].mxu0  ;;  %746 = vmatmul.mubr.msk.bf16.gmra.mrb[40].mxu1 %vm357_vm1, %v315_v25 }
 0x161   :  { %v269_v29 = vpop.f32.mrb[46].mxu0  ;;  %749 = vmatprep.mubr.msk.bf16.mxu1 %vm802_vm0, %v801_v0 }
 0x162   :  { %v270_v30 = vadd.f32 %v924_v51, %v269_v29  ;;  %v692_v31 = vpop.f32.mrb[47].mxu0  ;;  %v302_v32 = vmax.f32 %v267_v27, 0.0 }
 0x164   :  { %v303_v33 = vmax.f32 %v270_v30, 0.0 }
 0x166   :  { %v316_v34 = vpack.c.bf16 %v303_v33, %v302_v32 }
 0x167   :  { %v274_v35 = vpop.f32.mrb[48].mxu0 }
 0x168   :  { %v275_v36 = vadd.f32 %v924_v51, %v274_v35  ;;  %v695_v37 = vpop.f32.mrb[49].mxu0  ;;  %750 = vmatmul.mubr.msk.bf16.gmra.mrb[44].mxu1 %vm357_vm1, %v316_v34 }
 0x169   :  { %v277_v38 = vpop.f32.mrb[50].mxu0  ;;  %753 = vmatprep.mubr.msk.bf16.mxu1 %vm802_vm0, %v801_v0 }
 0x16a   :  { %v304_v39 = vmax.f32 %v275_v36, 0.0  ;;  %v696_v40 = vpop.f32.mrb[51].mxu0 }
 0x16c   :  { %v317_v41 = vpack.c.bf16 %v304_v39, %v304_v39 }
 0x170   :  { %754 = vmatmul.mubr.msk.bf16.gmra.mrb[48].mxu1 %vm357_vm1, %v317_v41 }
 0x1e3   :  { %v431_v43 = vpop.f32.mrb[0].mxu1 }
 0x1e4   :  { %v432_v51 = vadd.f32 %v991_v42, %v431_v43  ;;  %v707_v44 = vpop.f32.mrb[1].mxu1 }
 0x1e5   :  { %v434_v45 = vpop.f32.mrb[2].mxu1 }
 0x1e6   :  { %534 = vst.msk [vmem:[%s1123_s5] sm:$0xff] %vm533_vm2, %v432_v51  ;;  %v435_v0 = vadd.f32 %v991_v42, %v434_v45  ;;  %v708_v46 = vpop.f32.mrb[3].mxu1 }
 0x1e8   :  { %535 = vst.msk [vmem:[%s1123_s5 + $0x8] sm:$0xff] %vm533_vm2, %v435_v0 }
 0x1eb   :  { %v439_v47 = vpop.f32.mrb[4].mxu1 }
 0x1ec   :  { %v440_v48 = vadd.f32 %v991_v42, %v439_v47  ;;  %v711_v49 = vpop.f32.mrb[5].mxu1 }
 0x1ed   :  { %v442_v50 = vpop.f32.mrb[6].mxu1 }
 0x1ee   :  { %536 = vst.msk [vmem:[%s1123_s5 + $0x10] sm:$0xff] %vm533_vm2, %v440_v48  ;;  %v443_v52 = vadd.f32 %v991_v42, %v442_v50  ;;  %v712_v53 = vpop.f32.mrb[7].mxu1 }
 0x1f0   :  { %537 = vst.msk [vmem:[%s1123_s5 + $0x18] sm:$0xff] %vm533_vm2, %v443_v52 }
 0x1f3   :  { %v447_v54 = vpop.f32.mrb[8].mxu1 }
 0x1f4   :  { %v448_v55 = vadd.f32 %v991_v42, %v447_v54  ;;  %v715_v56 = vpop.f32.mrb[9].mxu1 }
 0x1f5   :  { %v450_v57 = vpop.f32.mrb[10].mxu1 }
 0x1f6   :  { %538 = vst.msk [vmem:[%s1123_s5 + $0x20] sm:$0xff] %vm533_vm2, %v448_v55  ;;  %v451_v58 = vadd.f32 %v991_v42, %v450_v57  ;;  %v716_v59 = vpop.f32.mrb[11].mxu1 }
 0x1f8   :  { %539 = vst.msk [vmem:[%s1123_s5 + $0x28] sm:$0xff] %vm533_vm2, %v451_v58 }
 0x1fb   :  { %v455_v60 = vpop.f32.mrb[12].mxu1 }
 0x1fc   :  { %v456_v61 = vadd.f32 %v991_v42, %v455_v60  ;;  %v719_v62 = vpop.f32.mrb[13].mxu1 }
 0x1fd   :  { %v458_v63 = vpop.f32.mrb[14].mxu1 }
 0x1fe   :  { %540 = vst.msk [vmem:[%s1123_s5 + $0x30] sm:$0xff] %vm533_vm2, %v456_v61  ;;  %v459_v1 = vadd.f32 %v991_v42, %v458_v63  ;;  %v720_v2 = vpop.f32.mrb[15].mxu1 }
 0x200   :  { %541 = vst.msk [vmem:[%s1123_s5 + $0x38] sm:$0xff] %vm533_vm2, %v459_v1 }
 0x203   :  { %v463_v3 = vpop.f32.mrb[16].mxu1 }
 0x204   :  { %v464_v4 = vadd.f32 %v991_v42, %v463_v3  ;;  %v723_v5 = vpop.f32.mrb[17].mxu1 }
 0x205   :  { %v466_v6 = vpop.f32.mrb[18].mxu1 }
 0x206   :  { %542 = vst.msk [vmem:[%s1123_s5 + $0x40] sm:$0xff] %vm533_vm2, %v464_v4  ;;  %v467_v7 = vadd.f32 %v991_v42, %v466_v6  ;;  %v724_v8 = vpop.f32.mrb[19].mxu1 }
 0x208   :  { %543 = vst.msk [vmem:[%s1123_s5 + $0x48] sm:$0xff] %vm533_vm2, %v467_v7 }
 0x20b   :  { %v471_v9 = vpop.f32.mrb[20].mxu1 }
 0x20c   :  { %v472_v10 = vadd.f32 %v991_v42, %v471_v9  ;;  %v727_v11 = vpop.f32.mrb[21].mxu1 }
 0x20d   :  { %v474_v12 = vpop.f32.mrb[22].mxu1 }
 0x20e   :  { %544 = vst.msk [vmem:[%s1123_s5 + $0x50] sm:$0xff] %vm533_vm2, %v472_v10  ;;  %v475_v13 = vadd.f32 %v991_v42, %v474_v12  ;;  %v728_v14 = vpop.f32.mrb[23].mxu1 }
 0x210   :  { %545 = vst.msk [vmem:[%s1123_s5 + $0x58] sm:$0xff] %vm533_vm2, %v475_v13 }
 0x213   :  { %v479_v15 = vpop.f32.mrb[24].mxu1 }
 0x214   :  { %v480_v16 = vadd.f32 %v991_v42, %v479_v15  ;;  %v731_v17 = vpop.f32.mrb[25].mxu1 }
 0x215   :  { %v482_v18 = vpop.f32.mrb[26].mxu1 }
 0x216   :  { %546 = vst.msk [vmem:[%s1123_s5 + $0x60] sm:$0xff] %vm533_vm2, %v480_v16  ;;  %v483_v19 = vadd.f32 %v991_v42, %v482_v18  ;;  %v732_v20 = vpop.f32.mrb[27].mxu1 }
 0x218   :  { %547 = vst.msk [vmem:[%s1123_s5 + $0x68] sm:$0xff] %vm533_vm2, %v483_v19 }
 0x21b   :  { %v487_v21 = vpop.f32.mrb[28].mxu1 }
 0x21c   :  { %v488_v22 = vadd.f32 %v991_v42, %v487_v21  ;;  %v735_v23 = vpop.f32.mrb[29].mxu1 }
 0x21d   :  { %v490_v24 = vpop.f32.mrb[30].mxu1 }
 0x21e   :  { %548 = vst.msk [vmem:[%s1123_s5 + $0x70] sm:$0xff] %vm533_vm2, %v488_v22  ;;  %v491_v25 = vadd.f32 %v991_v42, %v490_v24  ;;  %v736_v26 = vpop.f32.mrb[31].mxu1 }
 0x220   :  { %549 = vst.msk [vmem:[%s1123_s5 + $0x78] sm:$0xff] %vm533_vm2, %v491_v25 }
 0x223   :  { %v495_v27 = vpop.f32.mrb[32].mxu1 }
 0x224   :  { %v496_v28 = vadd.f32 %v991_v42, %v495_v27  ;;  %v739_v29 = vpop.f32.mrb[33].mxu1 }
 0x225   :  { %v498_v30 = vpop.f32.mrb[34].mxu1 }
 0x226   :  { %550 = vst.msk [vmem:[%s1123_s5 + $0x80] sm:$0xff] %vm533_vm2, %v496_v28  ;;  %v499_v31 = vadd.f32 %v991_v42, %v498_v30  ;;  %v740_v32 = vpop.f32.mrb[35].mxu1 }
 0x228   :  { %551 = vst.msk [vmem:[%s1123_s5 + $0x88] sm:$0xff] %vm533_vm2, %v499_v31 }
 0x22b   :  { %v503_v33 = vpop.f32.mrb[36].mxu1 }
 0x22c   :  { %v504_v34 = vadd.f32 %v991_v42, %v503_v33  ;;  %v743_v35 = vpop.f32.mrb[37].mxu1 }
 0x22d   :  { %v506_v36 = vpop.f32.mrb[38].mxu1 }
 0x22e   :  { %552 = vst.msk [vmem:[%s1123_s5 + $0x90] sm:$0xff] %vm533_vm2, %v504_v34  ;;  %v507_v37 = vadd.f32 %v991_v42, %v506_v36  ;;  %v744_v38 = vpop.f32.mrb[39].mxu1 }
 0x230   :  { %553 = vst.msk [vmem:[%s1123_s5 + $0x98] sm:$0xff] %vm533_vm2, %v507_v37 }
 0x233   :  { %v511_v39 = vpop.f32.mrb[40].mxu1 }
 0x234   :  { %v512_v40 = vadd.f32 %v991_v42, %v511_v39  ;;  %v747_v41 = vpop.f32.mrb[41].mxu1 }
 0x235   :  { %v514_v43 = vpop.f32.mrb[42].mxu1 }
 0x236   :  { %554 = vst.msk [vmem:[%s1123_s5 + $0xa0] sm:$0xff] %vm533_vm2, %v512_v40  ;;  %v515_v51 = vadd.f32 %v991_v42, %v514_v43  ;;  %v748_v44 = vpop.f32.mrb[43].mxu1 }
 0x238   :  { %555 = vst.msk [vmem:[%s1123_s5 + $0xa8] sm:$0xff] %vm533_vm2, %v515_v51 }
 0x23b   :  { %v519_v45 = vpop.f32.mrb[44].mxu1 }
 0x23c   :  { %v520_v0 = vadd.f32 %v991_v42, %v519_v45  ;;  %v751_v46 = vpop.f32.mrb[45].mxu1 }
 0x23d   :  { %v522_v47 = vpop.f32.mrb[46].mxu1 }
 0x23e   :  { %556 = vst.msk [vmem:[%s1123_s5 + $0xb0] sm:$0xff] %vm533_vm2, %v520_v0  ;;  %v523_v48 = vadd.f32 %v991_v42, %v522_v47  ;;  %v752_v49 = vpop.f32.mrb[47].mxu1 }
 0x240   :  { %557 = vst.msk [vmem:[%s1123_s5 + $0xb8] sm:$0xff] %vm533_vm2, %v523_v48 }
 0x243   :  { %v527_v50 = vpop.f32.mrb[48].mxu1 }
 0x244   :  { %v528_v52 = vadd.f32 %v991_v42, %v527_v50  ;;  %v755_v53 = vpop.f32.mrb[49].mxu1 }
 0x245   :  { %v530_v54 = vpop.f32.mrb[50].mxu1 }
 0x246   :  { %558 = vst.msk [vmem:[%s1123_s5 + $0xc0] sm:$0xff] %vm533_vm2, %v528_v52  ;;  %v756_v55 = vpop.f32.mrb[51].mxu1 }
 0x247   :  { %563 = vsyncpa [#allocation3], 1 }

</bundles_post_ra>
